<compile_context>
chip_gen: v5e
topology: v5e:2x2
jax: 0.10.0
libtpu: 0.0.40
codegen_flags: <defaults>
</compile_context>

<pallas_src>
import numpy as np

import jax
import jax.numpy as jnp
from jax.experimental import pallas as pl
from jax.experimental.pallas import tpu as pltpu


_MIB = 1024 * 1024
_TARGET_X_BYTES = 2 * _MIB   # ~2 MiB of X per grid step (>=85% of HBM roofline regime)
_VMEM_BUDGET = 20 * _MIB     # accounted buffers; leaves headroom under the limit below
_VMEM_LIMIT = 32 * _MIB      # explicit scoped-VMEM request (safe on v5e/v6e/v7x)
_MAX_TILE_B = 8192


def _round_up(x, m):
    return (x + m - 1) // m * m


def _two_tensorcores():
    """True on megacore / 2-TensorCore chips where a 'parallel' grid axis is
    actually sharded across cores (v4, v5p, v7x)."""
    try:
        kind = jax.devices()[0].device_kind.lower()
    except Exception:
        return False
    return ("v7" in kind) or ("v4" in kind) or ("v5p" in kind)


def _make_kernel(compute_dtype, group):
    """group == 1: store the natural (tile_b, R) block.
    group  > 1: repack into a lane-dense (tile_b/group, group*R == 128) block."""

    def kernel(x_ref, w1_ref, b1_ref, w2_ref, b2_ref, o_ref, *scratch):
        # Layer 1 on the MXU, f32 accumulation.  X is cast AFTER the DMA so the
        # HBM stream stays in the caller's dtype.
        x = x_ref[...].astype(compute_dtype)
        h = jnp.dot(x, w1_ref[...], preferred_element_type=jnp.float32)
        # Bias + tanh in f32 (EUP transcendental; safe on v5e's f32-only VPU).
        h = jnp.tanh(h + b1_ref[...])
        # Layer 2 on the MXU, f32 accumulation.
        y = jnp.dot(h.astype(compute_dtype), w2_ref[...],
                    preferred_element_type=jnp.float32)
        y = y + b2_ref[...]

        if group == 1:
            o_ref[...] = y.astype(o_ref.dtype)
        else:
            # Lane-dense repack: o[j, k*R:(k+1)*R] = y[group*j + k, :], which is
            # exactly y reshaped row-major to (tile_b/group, 128) -- so the
            # wrapper's reshape back to (tile_b, R) is a zero-copy view.  The
            # strided reads / lane concat are VMEM+XLU work on otherwise idle
            # slots of this mem-bound kernel.
            y_s, = scratch
            y_s[...] = y
            tb_g = o_ref.shape[0]
            parts = [y_s[pl.ds(k, tb_g, stride=group), :] for k in range(group)]
            o_ref[...] = jnp.concatenate(parts, axis=-1).astype(o_ref.dtype)

    return kernel


def _pick_tile_b(B, D, H, R, x_itemsize, out_itemsize, round_to, two_tc,
                 resident_w_bytes, max_tile_b=None):
    # D-aware target: ~2 MiB of streamed X per grid step.
    tile_b = max(round_to, _TARGET_X_BYTES // (x_itemsize * D))

    # Explicit VMEM budget: X and output are double-buffered by the pipeline;
    # add the lane-repack scratch and headroom for in-kernel intermediates.
    # Weights are resident once (single-buffered).
    per_row = (2 * D * x_itemsize          # X double buffer
               + 2 * R * out_itemsize      # output double buffer
               + R * 4                     # lane-repack scratch (f32)
               + (D + 2 * H + 2 * R) * 4)  # in-kernel intermediates headroom
    avail = max(_VMEM_BUDGET - resident_w_bytes, round_to * per_row)
    tile_b = min(tile_b, avail // per_row, _MAX_TILE_B)

    if max_tile_b is not None:
        tile_b = min(tile_b, max_tile_b)
    tile_b = min(tile_b, B)        # never (much) bigger than the batch
    if two_tc and B > 2 * round_to:
        # Keep >= 2 grid steps so both TensorCores get work.  On 1-TC chips
        # splitting only doubles per-step overhead, so it is skipped there.
        tile_b = min(tile_b, -(-B // 2))
    return max(round_to, _round_up(tile_b, round_to))


def _run_kernel(x, w1, b1, w2, b2, *, tile_b, compute_dtype, out_dtype,
                resident_weights, dense_out):
    B, D = x.shape
    H = w1.shape[1]
    R = w2.shape[1]
    n_tiles = pl.cdiv(B, tile_b)
    group = (128 // R) if dense_out else 1
    grid = (n_tiles,)

    if resident_weights:
        # Whole-array VMEM residency: copied in once, single-buffered, never
        # re-fetched across grid steps.
        w_specs = [pl.BlockSpec(memory_space=pltpu.MemorySpace.VMEM)
                   for _ in range(4)]
    else:
        # Fallback: pipelined full-size blocks with a constant index_map (the
        # pipeline skips re-fetching unchanged blocks, but allocates 2x VMEM).
        w_specs = [pl.BlockSpec(w1.shape, lambda i: (0, 0)),
                   pl.BlockSpec(b1.shape, lambda i: (0, 0)),
                   pl.BlockSpec(w2.shape, lambda i: (0, 0)),
                   pl.BlockSpec(b2.shape, lambda i: (0, 0))]

    in_specs = [pl.BlockSpec((tile_b, D), lambda i: (i, 0))] + w_specs

    if dense_out:
        tb_g = tile_b // group
        out_shape = jax.ShapeDtypeStruct((n_tiles * tb_g, 128), out_dtype)
        out_spec = pl.BlockSpec((tb_g, 128), lambda i: (i, 0))
        scratch = [pltpu.VMEM((tile_b, R), jnp.float32)]
    else:
        # Output sized to whole tiles so every output block is full; the tail
        # garbage rows (fed by OOB X reads) are sliced off below.
        out_shape = jax.ShapeDtypeStruct((n_tiles * tile_b, R), out_dtype)
        out_spec = pl.BlockSpec((tile_b, R), lambda i: (i, 0))
        scratch = []

    out = pl.pallas_call(
        _make_kernel(compute_dtype, group),
        out_shape=out_shape,
        grid_spec=pltpu.PrefetchScalarGridSpec(
            num_scalar_prefetch=0,
            grid=grid,
            in_specs=in_specs,
            out_specs=out_spec,
            scratch_shapes=scratch),
        compiler_params=pltpu.CompilerParams(
            dimension_semantics=("parallel",),
            vmem_limit_bytes=_VMEM_LIMIT),
    )(x, w1, b1, w2, b2)

    # Zero-copy view back to (rows, R); drop the padded tail rows if ragged.
    out = out.reshape(n_tiles * tile_b, R)
    return out[:B] if n_tiles * tile_b != B else out


def deep_svdd_forward(x, w1, b1, w2, b2, *, use_bf16=True,
                      out_dtype=jnp.float32, max_tile_b=None):
    """Fused Linear->Tanh->Linear forward.

    x  : (B, D)                     (streamed as-is; f32 or bf16)
    w1 : (D, H)   H = D // 2        (transposed vs. PyTorch layout)
    b1 : (H,) or (1, H)
    w2 : (H, R)   R = D // 4        (transposed vs. PyTorch layout)
    b2 : (R,) or (1, R)
    returns (B, R) in out_dtype (default float32)
    """
    B, D = x.shape
    H = w1.shape[1]
    R = w2.shape[1]

    compute_dtype = jnp.bfloat16 if use_bf16 else jnp.float32
    # Weights are tiny, read once and held resident in VMEM: a one-time cast to
    # the compute dtype halves their resident footprint.  X itself is NOT cast
    # in the wrapper (that would cost an extra full HBM pass over the only
    # large stream); it is converted in-kernel after the DMA.
    w1c = w1.astype(compute_dtype)
    w2c = w2.astype(compute_dtype)
    b1f = jnp.asarray(b1, jnp.float32).reshape(1, -1)
    b2f = jnp.asarray(b2, jnp.float32).reshape(1, -1)

    x_itemsize = x.dtype.itemsize
    out_itemsize = np.dtype(out_dtype).itemsize
    resident_w_bytes = ((D * H + H * R) * np.dtype(compute_dtype).itemsize
                        + (H + R) * 4)

    # Lane-dense repack only when R is a power-of-two fraction of 128 lanes.
    dense_ok = (R < 128) and (128 % R == 0)
    group = (128 // R) if dense_ok else 1
    base = 16 if x_itemsize < 4 else 8          # full sublane packing for X
    round_to = max(base, 8 * group) if dense_ok else base

    tile_b = _pick_tile_b(B, D, H, R, x_itemsize, out_itemsize, round_to,
                          _two_tensorcores(), resident_w_bytes, max_tile_b)

    try:
        return _run_kernel(x, w1c, b1f, w2c, b2f, tile_b=tile_b,
                           compute_dtype=compute_dtype, out_dtype=out_dtype,
                           resident_weights=True, dense_out=dense_ok)
    except Exception:
        # Conservative fallback (identical math): pipelined constant-index
        # weight blocks and the natural (B, R) output layout, in case
        # whole-array VMEM operands or the strided lane-repack do not lower on
        # this jax/libtpu combination.
        return _run_kernel(x, w1c, b1f, w2c, b2f, tile_b=tile_b,
                           compute_dtype=compute_dtype, out_dtype=out_dtype,
                           resident_weights=False, dense_out=False)


def init_params(key, D):
    """Deterministic PyTorch-style init: U(-1/sqrt(fan_in), 1/sqrt(fan_in))."""
    H, R = D // 2, D // 4
    k1, k2, k3, k4 = jax.random.split(key, 4)
    lim1 = 1.0 / jnp.sqrt(D)
    lim2 = 1.0 / jnp.sqrt(H)
    w1 = jax.random.uniform(k1, (D, H), jnp.float32, -lim1, lim1)
    b1 = jax.random.uniform(k2, (1, H), jnp.float32, -lim1, lim1)
    w2 = jax.random.uniform(k3, (H, R), jnp.float32, -lim2, lim2)
    b2 = jax.random.uniform(k4, (1, R), jnp.float32, -lim2, lim2)
    return w1, b1, w2, b2


if __name__ == "__main__":
    D = 128                     # hidden = 64, rep_dim = 32
    key = jax.random.PRNGKey(0)
    kx, kp = jax.random.split(key)
    w1, b1, w2, b2 = init_params(kp, D)

    # Case 1: ragged batch, single grid step, exact f32 compute path.
    B1 = 50
    x1 = jax.random.normal(kx, (B1, D), jnp.float32)
    ref1 = jnp.tanh(x1 @ w1 + b1) @ w2 + b2
    out1 = jax.block_until_ready(
        deep_svdd_forward(x1, w1, b1, w2, b2, use_bf16=False))
    assert out1.shape == (B1, D // 4)
    assert jnp.allclose(out1, ref1, atol=1e-5, rtol=1e-5), \
        "f32 kernel mismatch vs reference (single tile)"

    # Case 2: forced small tile -> multi-step grid with a partial last block.
    B2 = 200
    x2 = jax.random.normal(jax.random.fold_in(kx, 1), (B2, D), jnp.float32)
    ref2 = jnp.tanh(x2 @ w1 + b1) @ w2 + b2
    out2 = jax.block_until_ready(
        deep_svdd_forward(x2, w1, b1, w2, b2, use_bf16=False, max_tile_b=64))
    assert out2.shape == (B2, D // 4)
    assert jnp.allclose(out2, ref2, atol=1e-5, rtol=1e-5), \
        "f32 kernel mismatch vs reference (multi tile)"

    # Case 3: bf16 fast path (bf16 matmul operands, f32 accumulation/bias/tanh).
    out3 = jax.block_until_ready(deep_svdd_forward(x1, w1, b1, w2, b2))
    assert out3.shape == (B1, D // 4)
    assert jnp.allclose(out3, ref1, atol=5e-2, rtol=5e-2), \
        "bf16 kernel mismatch vs reference"

    print("KERNEL_OK")
</pallas_src>

<mosaic_0001>
module attributes {stable_mosaic.version = 11 : i64} {
  func.func @kernel(%arg0: i32, %arg1: memref<64x128xf32, #tpu.memory_space<vmem>>, %arg2: memref<128x64xf32, #tpu.memory_space<vmem>>, %arg3: memref<1x64xf32, #tpu.memory_space<vmem>>, %arg4: memref<64x32xf32, #tpu.memory_space<vmem>>, %arg5: memref<1x32xf32, #tpu.memory_space<vmem>>, %arg6: memref<16x128xf32, #tpu.memory_space<vmem>>, %arg7: memref<64x32xf32, #tpu.memory_space<vmem>>) attributes {dimension_semantics = [#tpu.dimension_semantics<parallel>], iteration_bounds = array<i64: 1>, scalar_prefetch = 0 : i64, scratch_operands = 1 : i64, tpu.core_type = #tpu.core_type<tc>, window_params = [{transform_indices = @transform_0, window_bounds = array<i64: 64, 128>}, {pipeline_mode = #tpu.pipeline_mode<synchronous>, transform_indices = @transform_1, window_bounds = array<i64: 128, 64>}, {pipeline_mode = #tpu.pipeline_mode<synchronous>, transform_indices = @transform_2, window_bounds = array<i64: 1, 64>}, {pipeline_mode = #tpu.pipeline_mode<synchronous>, transform_indices = @transform_3, window_bounds = array<i64: 64, 32>}, {pipeline_mode = #tpu.pipeline_mode<synchronous>, transform_indices = @transform_4, window_bounds = array<i64: 1, 32>}, {transform_indices = @transform_5, window_bounds = array<i64: 16, 128>}]} {
    %c0 = arith.constant 0 : index
    %c0_0 = arith.constant 0 : index
    %0 = vector.load %arg1[%c0, %c0_0] : memref<64x128xf32, #tpu.memory_space<vmem>>, vector<64x128xf32>
    %c0_1 = arith.constant 0 : index
    %c0_2 = arith.constant 0 : index
    %1 = vector.load %arg2[%c0_1, %c0_2] : memref<128x64xf32, #tpu.memory_space<vmem>>, vector<128x64xf32>
    %cst = arith.constant dense<0.000000e+00> : vector<64x64xf32>
    %2 = tpu.matmul %0, %1, %cst {dimension_numbers = #tpu.dot_dimension_numbers<[1], [0], [0], [1], [0, 0, 1, 1], [], []>} : vector<64x128xf32>, vector<128x64xf32>, vector<64x64xf32> -> vector<64x64xf32>
    %c0_3 = arith.constant 0 : index
    %c0_4 = arith.constant 0 : index
    %3 = vector.load %arg3[%c0_3, %c0_4] : memref<1x64xf32, #tpu.memory_space<vmem>>, vector<1x64xf32>
    %4 = vector.broadcast %3 : vector<1x64xf32> to vector<64x64xf32>
    %5 = arith.addf %2, %4 : vector<64x64xf32>
    %6 = math.tanh %5 : vector<64x64xf32>
    %c0_5 = arith.constant 0 : index
    %c0_6 = arith.constant 0 : index
    %7 = vector.load %arg4[%c0_5, %c0_6] : memref<64x32xf32, #tpu.memory_space<vmem>>, vector<64x32xf32>
    %cst_7 = arith.constant dense<0.000000e+00> : vector<64x32xf32>
    %8 = tpu.matmul %6, %7, %cst_7 {dimension_numbers = #tpu.dot_dimension_numbers<[1], [0], [0], [1], [0, 0, 1, 1], [], []>} : vector<64x64xf32>, vector<64x32xf32>, vector<64x32xf32> -> vector<64x32xf32>
    %c0_8 = arith.constant 0 : index
    %c0_9 = arith.constant 0 : index
    %9 = vector.load %arg5[%c0_8, %c0_9] : memref<1x32xf32, #tpu.memory_space<vmem>>, vector<1x32xf32>
    %10 = vector.broadcast %9 : vector<1x32xf32> to vector<64x32xf32>
    %11 = arith.addf %8, %10 : vector<64x32xf32>
    %c0_10 = arith.constant 0 : index
    %c0_11 = arith.constant 0 : index
    %12 = vector.load %arg7[%c0_10, %c0_11] : memref<64x32xf32, #tpu.memory_space<vmem>>, vector<64x32xf32>
    tpu.vector_store %arg7[%c0_10, %c0_11], %11 {strides = array<i32>} : memref<64x32xf32, #tpu.memory_space<vmem>>, vector<64x32xf32>,
    %c0_12 = arith.constant 0 : index
    %c0_13 = arith.constant 0 : index
    %13 = tpu.strided_load %arg7[%c0_12, %c0_13] {strides = array<i32: 4, 1>} : memref<64x32xf32, #tpu.memory_space<vmem>>, vector<16x32xf32>
    %c1 = arith.constant 1 : index
    %c0_14 = arith.constant 0 : index
    %14 = tpu.strided_load %arg7[%c1, %c0_14] {strides = array<i32: 4, 1>} : memref<64x32xf32, #tpu.memory_space<vmem>>, vector<16x32xf32>
    %c2 = arith.constant 2 : index
    %c0_15 = arith.constant 0 : index
    %15 = tpu.strided_load %arg7[%c2, %c0_15] {strides = array<i32: 4, 1>} : memref<64x32xf32, #tpu.memory_space<vmem>>, vector<16x32xf32>
    %c3 = arith.constant 3 : index
    %c0_16 = arith.constant 0 : index
    %16 = tpu.strided_load %arg7[%c3, %c0_16] {strides = array<i32: 4, 1>} : memref<64x32xf32, #tpu.memory_space<vmem>>, vector<16x32xf32>
    %17 = tpu.concatenate %13, %14, %15, %16 in 1 : vector<16x32xf32>, vector<16x32xf32>, vector<16x32xf32>, vector<16x32xf32> -> vector<16x128xf32>
    %c0_17 = arith.constant 0 : index
    %c0_18 = arith.constant 0 : index
    %18 = vector.load %arg6[%c0_17, %c0_18] : memref<16x128xf32, #tpu.memory_space<vmem>>, vector<16x128xf32>
    tpu.vector_store %arg6[%c0_17, %c0_18], %17 {strides = array<i32>} : memref<16x128xf32, #tpu.memory_space<vmem>>, vector<16x128xf32>,
    return
  }
  func.func @transform_0(%arg0: i32) -> (i32, i32) {
    %c0_i32 = arith.constant 0 : i32
    %c0_i32_0 = arith.constant 0 : i32
    return %arg0, %c0_i32 : i32, i32
  }
  func.func @transform_1(%arg0: i32) -> (i32, i32) {
    %c0_i32 = arith.constant 0 : i32
    %c0_i32_0 = arith.constant 0 : i32
    %c0_i32_1 = arith.constant 0 : i32
    return %c0_i32, %c0_i32_0 : i32, i32
  }
  func.func @transform_2(%arg0: i32) -> (i32, i32) {
    %c0_i32 = arith.constant 0 : i32
    %c0_i32_0 = arith.constant 0 : i32
    %c0_i32_1 = arith.constant 0 : i32
    return %c0_i32, %c0_i32_0 : i32, i32
  }
  func.func @transform_3(%arg0: i32) -> (i32, i32) {
    %c0_i32 = arith.constant 0 : i32
    %c0_i32_0 = arith.constant 0 : i32
    %c0_i32_1 = arith.constant 0 : i32
    return %c0_i32, %c0_i32_0 : i32, i32
  }
  func.func @transform_4(%arg0: i32) -> (i32, i32) {
    %c0_i32 = arith.constant 0 : i32
    %c0_i32_0 = arith.constant 0 : i32
    %c0_i32_1 = arith.constant 0 : i32
    return %c0_i32, %c0_i32_0 : i32, i32
  }
  func.func @transform_5(%arg0: i32) -> (i32, i32) {
    %c0_i32 = arith.constant 0 : i32
    %c0_i32_0 = arith.constant 0 : i32
    return %arg0, %c0_i32 : i32, i32
  }
}

module attributes {stable_mosaic.version = 11 : i64} {
  func.func @kernel(%arg0: i32, %arg1: memref<64x128xf32, #tpu.memory_space<vmem>>, %arg2: memref<128x64xf32, #tpu.memory_space<vmem>>, %arg3: memref<1x64xf32, #tpu.memory_space<vmem>>, %arg4: memref<64x32xf32, #tpu.memory_space<vmem>>, %arg5: memref<1x32xf32, #tpu.memory_space<vmem>>, %arg6: memref<64x32xf32, #tpu.memory_space<vmem>>) attributes {dimension_semantics = [#tpu.dimension_semantics<parallel>], iteration_bounds = array<i64: 1>, scalar_prefetch = 0 : i64, scratch_operands = 0 : i64, tpu.core_type = #tpu.core_type<tc>, window_params = [{transform_indices = @transform_0, window_bounds = array<i64: 64, 128>}, {pipeline_mode = #tpu.pipeline_mode<synchronous>, transform_indices = @transform_1, window_bounds = array<i64: 128, 64>}, {pipeline_mode = #tpu.pipeline_mode<synchronous>, transform_indices = @transform_2, window_bounds = array<i64: 1, 64>}, {pipeline_mode = #tpu.pipeline_mode<synchronous>, transform_indices = @transform_3, window_bounds = array<i64: 64, 32>}, {pipeline_mode = #tpu.pipeline_mode<synchronous>, transform_indices = @transform_4, window_bounds = array<i64: 1, 32>}, {transform_indices = @transform_5, window_bounds = array<i64: 64, 32>}]} {
    %c0 = arith.constant 0 : index
    %c0_0 = arith.constant 0 : index
    %0 = vector.load %arg1[%c0, %c0_0] : memref<64x128xf32, #tpu.memory_space<vmem>>, vector<64x128xf32>
    %c0_1 = arith.constant 0 : index
    %c0_2 = arith.constant 0 : index
    %1 = vector.load %arg2[%c0_1, %c0_2] : memref<128x64xf32, #tpu.memory_space<vmem>>, vector<128x64xf32>
    %cst = arith.constant dense<0.000000e+00> : vector<64x64xf32>
    %2 = tpu.matmul %0, %1, %cst {dimension_numbers = #tpu.dot_dimension_numbers<[1], [0], [0], [1], [0, 0, 1, 1], [], []>} : vector<64x128xf32>, vector<128x64xf32>, vector<64x64xf32> -> vector<64x64xf32>
    %c0_3 = arith.constant 0 : index
    %c0_4 = arith.constant 0 : index
    %3 = vector.load %arg3[%c0_3, %c0_4] : memref<1x64xf32, #tpu.memory_space<vmem>>, vector<1x64xf32>
    %4 = vector.broadcast %3 : vector<1x64xf32> to vector<64x64xf32>
    %5 = arith.addf %2, %4 : vector<64x64xf32>
    %6 = math.tanh %5 : vector<64x64xf32>
    %c0_5 = arith.constant 0 : index
    %c0_6 = arith.constant 0 : index
    %7 = vector.load %arg4[%c0_5, %c0_6] : memref<64x32xf32, #tpu.memory_space<vmem>>, vector<64x32xf32>
    %cst_7 = arith.constant dense<0.000000e+00> : vector<64x32xf32>
    %8 = tpu.matmul %6, %7, %cst_7 {dimension_numbers = #tpu.dot_dimension_numbers<[1], [0], [0], [1], [0, 0, 1, 1], [], []>} : vector<64x64xf32>, vector<64x32xf32>, vector<64x32xf32> -> vector<64x32xf32>
    %c0_8 = arith.constant 0 : index
    %c0_9 = arith.constant 0 : index
    %9 = vector.load %arg5[%c0_8, %c0_9] : memref<1x32xf32, #tpu.memory_space<vmem>>, vector<1x32xf32>
    %10 = vector.broadcast %9 : vector<1x32xf32> to vector<64x32xf32>
    %11 = arith.addf %8, %10 : vector<64x32xf32>
    %c0_10 = arith.constant 0 : index
    %c0_11 = arith.constant 0 : index
    %12 = vector.load %arg6[%c0_10, %c0_11] : memref<64x32xf32, #tpu.memory_space<vmem>>, vector<64x32xf32>
    tpu.vector_store %arg6[%c0_10, %c0_11], %11 {strides = array<i32>} : memref<64x32xf32, #tpu.memory_space<vmem>>, vector<64x32xf32>,
    return
  }
  func.func @transform_0(%arg0: i32) -> (i32, i32) {
    %c0_i32 = arith.constant 0 : i32
    %c0_i32_0 = arith.constant 0 : i32
    return %arg0, %c0_i32 : i32, i32
  }
  func.func @transform_1(%arg0: i32) -> (i32, i32) {
    %c0_i32 = arith.constant 0 : i32
    %c0_i32_0 = arith.constant 0 : i32
    %c0_i32_1 = arith.constant 0 : i32
    return %c0_i32, %c0_i32_0 : i32, i32
  }
  func.func @transform_2(%arg0: i32) -> (i32, i32) {
    %c0_i32 = arith.constant 0 : i32
    %c0_i32_0 = arith.constant 0 : i32
    %c0_i32_1 = arith.constant 0 : i32
    return %c0_i32, %c0_i32_0 : i32, i32
  }
  func.func @transform_3(%arg0: i32) -> (i32, i32) {
    %c0_i32 = arith.constant 0 : i32
    %c0_i32_0 = arith.constant 0 : i32
    %c0_i32_1 = arith.constant 0 : i32
    return %c0_i32, %c0_i32_0 : i32, i32
  }
  func.func @transform_4(%arg0: i32) -> (i32, i32) {
    %c0_i32 = arith.constant 0 : i32
    %c0_i32_0 = arith.constant 0 : i32
    %c0_i32_1 = arith.constant 0 : i32
    return %c0_i32, %c0_i32_0 : i32, i32
  }
  func.func @transform_5(%arg0: i32) -> (i32, i32) {
    %c0_i32 = arith.constant 0 : i32
    %c0_i32_0 = arith.constant 0 : i32
    return %arg0, %c0_i32 : i32, i32
  }
}

</mosaic_0001>

<bundles_post_ra>
// kernel: tpu_custom_call.1
= control target key start
LH: loop header
LB: loop body
LE: loop exit
PB: predicated region body
PF: predicated region fallthrough
CT: control target
= control target key end

     0   :  { %s496_s0 = inlined_call_operand.vmem [shape: f32[50,128], index: 0, kind: input, shape index: {}]   ;;  %s497_s1 = inlined_call_operand.vmem [shape: f32[128,64], index: 1, kind: input, shape index: {}]   ;;  %s498_s2 = inlined_call_operand.vmem [shape: f32[1,64], index: 2, kind: input, shape index: {}]   ;;  %s499_s3 = inlined_call_operand.vmem [shape: f32[64,32], index: 3, kind: input, shape index: {}]   ;;  %s500_s4 = inlined_call_operand.vmem [shape: f32[1,32], index: 4, kind: input, shape index: {}]   ;;  %s501_s5 = inlined_call_operand.hbm [shape: f32[16,128], index: 5, kind: output, shape index: {}]  }
   0x1   :  { %v44_v0 = vld [vmem:[%s497_s1 + $0x78] sm:$0xff]  ;;  %v43_v1 = vld [vmem:[%s497_s1 + $0x70] sm:$0xff]  ;;  %v42_v2 = vld [vmem:[%s497_s1 + $0x68] sm:$0xff] }
   0x2   :  { %49 = vmatpush.msra.mxu0 %v44_v0  ;;  %259 = vmatpush.msra.mxu2 %v44_v0  ;;  %v41_v3 = vld [vmem:[%s497_s1 + $0x60] sm:$0xff]  ;;  %v40_v4 = vld [vmem:[%s497_s1 + $0x58] sm:$0xff] }
   0x4   :  { %50 = vmatpush.msra.mxu0 %v43_v1  ;;  %260 = vmatpush.msra.mxu2 %v43_v1 }
   0x6   :  { %51 = vmatpush.msra.mxu0 %v42_v2  ;;  %261 = vmatpush.msra.mxu2 %v42_v2 }
   0x8   :  { %52 = vmatpush.msra.mxu0 %v41_v3  ;;  %262 = vmatpush.msra.mxu2 %v41_v3 }
   0x9   :  { %10 = vsyncpa [#allocation4], 0  ;;  %v39_v5 = vld [vmem:[%s497_s1 + $0x50] sm:$0xff]  ;;  %v38_v6 = vld [vmem:[%s497_s1 + $0x48] sm:$0xff]  ;;  %vm110_vm0 = vcmask 523264   ;;  %vm176_vm1 = vcmask 261120  }
   0xa   :  { %53 = vmatpush.msra.mxu0 %v40_v4  ;;  %263 = vmatpush.msra.mxu2 %v40_v4  ;;  %v37_v7 = vld [vmem:[%s497_s1 + $0x40] sm:$0xff]  ;;  %v36_v8 = vld [vmem:[%s497_s1 + $0x38] sm:$0xff]  ;;  %v35_v9 = vld [vmem:[%s497_s1 + $0x30] sm:$0xff]  ;;  %s335_s7 = smov 32   ;;  %vm228_vm2 = vcmask 785408   ;;  %s336_s8 = smov [#allocation3]  }
   0xb   :  { %v34_v10 = vld [vmem:[%s497_s1 + $0x28] sm:$0xff]  ;;  %v33_v11 = vld [vmem:[%s497_s1 + $0x20] sm:$0xff]  ;;  %v32_v12 = vld [vmem:[%s497_s1 + $0x18] sm:$0xff]  ;;  %s237_s9 = sshll.u32 %s336_s8, 4  ;;  %s239_s12 = sshll.u32 %s501_s5, 4  ;;  %s238_s9 = int_to_ptr.vmem [resolvable:$true] %s237_s9  ;;  %s240_s12 = int_to_ptr.hbm [resolvable:$true] %s239_s12 }
   0xc   :  { %54 = vmatpush.msra.mxu0 %v39_v5  ;;  %264 = vmatpush.msra.mxu2 %v39_v5  ;;  %v31_v13 = vld [vmem:[%s497_s1 + $0x10] sm:$0xff]  ;;  %v30_v14 = vld [vmem:[%s497_s1 + $0x8] sm:$0xff]  ;;  %v29_v15 = vld [vmem:[%s497_s1] sm:$0xff]  ;;  %s334_s1 = smov 64   ;;  %s337_s13 = smov 128  }
   0xd   :  { %v21_v16 = vld [vmem:[%s496_s0] sm:$0xff]  ;;  %v24_v17 = vld [vmem:[%s496_s0 + $0x18] sm:$0xff]  ;;  %v104_v19 = vld [vmem:[%s499_s3 + $0x30] sm:$0xff]  ;;  %s338_s14 = smov 8  }
   0xe   :  { %55 = vmatpush.msra.mxu0 %v38_v6  ;;  %265 = vmatpush.msra.mxu2 %v38_v6  ;;  %v105_v18 = vld [vmem:[%s499_s3 + $0x38] sm:$0xff]  ;;  %v103_v20 = vld [vmem:[%s499_s3 + $0x28] sm:$0xff]  ;;  %v25_v22 = vld [vmem:[%s496_s0 + $0x20] sm:$0xff] }
   0xf   :  { %143 = vmatpush.msra.mxu1 %v105_v18  ;;  %275 = vmatpush.msra.mxu3 %v105_v18  ;;  %v22_v21 = vld [vmem:[%s496_s0 + $0x8] sm:$0xff]  ;;  %v23_v23 = vld [vmem:[%s496_s0 + $0x10] sm:$0xff]  ;;  %v28_v26 = vld [vmem:[%s496_s0 + $0x38] sm:$0xff] }
  0x10   :  { %56 = vmatpush.msra.mxu0 %v37_v7  ;;  %266 = vmatpush.msra.mxu2 %v37_v7  ;;  %v26_v24 = vld [vmem:[%s496_s0 + $0x28] sm:$0xff]  ;;  %v27_v25 = vld [vmem:[%s496_s0 + $0x30] sm:$0xff]  ;;  %v102_v27 = vld [vmem:[%s499_s3 + $0x20] sm:$0xff] }
  0x11   :  { %144 = vmatpush.msra.mxu1 %v104_v19  ;;  %276 = vmatpush.msra.mxu3 %v104_v19  ;;  %v101_v28 = vld [vmem:[%s499_s3 + $0x18] sm:$0xff]  ;;  %v100_v29 = vld [vmem:[%s499_s3 + $0x10] sm:$0xff]  ;;  %v99_v30 = vld [vmem:[%s499_s3 + $0x8] sm:$0xff] }
  0x12   :  { %57 = vmatpush.msra.mxu0 %v36_v8  ;;  %267 = vmatpush.msra.mxu2 %v36_v8  ;;  %v98_v31 = vld [vmem:[%s499_s3] sm:$0xff] }
  0x13   :  { %145 = vmatpush.msra.mxu1 %v103_v20  ;;  %277 = vmatpush.msra.mxu3 %v103_v20  ;;  %v289_v32 = vld [vmem:[%s498_s2] ss:$0 sm:$0xff] }
  0x14   :  { %58 = vmatpush.msra.mxu0 %v35_v9  ;;  %268 = vmatpush.msra.mxu2 %v35_v9  ;;  %v290_v57 = vld [vmem:[%s500_s4] ss:$0 sm:$0xff]  ;;  %s333_s4 = smov 96  }
  0x15   :  { %146 = vmatpush.msra.mxu1 %v102_v27  ;;  %278 = vmatpush.msra.mxu3 %v102_v27 }
  0x16   :  { %59 = vmatpush.msra.mxu0 %v34_v10  ;;  %269 = vmatpush.msra.mxu2 %v34_v10 }
  0x17   :  { %147 = vmatpush.msra.mxu1 %v101_v28  ;;  %279 = vmatpush.msra.mxu3 %v101_v28 }
  0x18   :  { %60 = vmatpush.msra.mxu0 %v33_v11  ;;  %270 = vmatpush.msra.mxu2 %v33_v11 }
  0x19   :  { %148 = vmatpush.msra.mxu1 %v100_v29  ;;  %280 = vmatpush.msra.mxu3 %v100_v29 }
  0x1a   :  { %61 = vmatpush.msra.mxu0 %v32_v12  ;;  %271 = vmatpush.msra.mxu2 %v32_v12 }
  0x1b   :  { %149 = vmatpush.msra.mxu1 %v99_v30  ;;  %281 = vmatpush.msra.mxu3 %v99_v30 }
  0x1c   :  { %62 = vmatpush.msra.mxu0 %v31_v13  ;;  %272 = vmatpush.msra.mxu2 %v31_v13 }
  0x1d   :  { %150 = vmatpush.msra.mxu1 %v98_v31  ;;  %282 = vmatpush.msra.mxu3 %v98_v31 }
  0x1e   :  { %63 = vmatpush.msra.mxu0 %v30_v14  ;;  %273 = vmatpush.msra.mxu2 %v30_v14 }
  0x20   :  { %64 = vmatpush.msra.mxu0 %v29_v15  ;;  %274 = vmatpush.msra.mxu2 %v29_v15 }
  0x21   :  { %65 = vmatmul.f32.vlgmr.msra.gmra.mxu0 %v21_v16  ;;  %74 = vmatmul.f32.vlgmr.msra.gmra.mxu2 %v24_v17 }
  0x29   :  { %68 = vmatmul.f32.gmra.mxu0 %v22_v21  ;;  %77 = vmatmul.f32.gmra.mxu2 %v25_v22 }
  0x31   :  { %71 = vmatmul.f32.gmra.mxu0 %v23_v23  ;;  %80 = vmatmul.f32.gmra.mxu2 %v26_v24 }
  0x39   :  { %83 = vmatmul.f32.gmra.mxu2 %v27_v25 }
  0x41   :  { %86 = vmatmul.f32.gmra.mxu2 %v28_v26 }
  0x9e   :  { %v66_v33 = vpop.f32.mrf.mxu0 }
  0x9f   :  { %v67_v34 = vadd.f32 %v289_v32, %v66_v33 }
  0xa1   :  { %291 = vtanh.f32 %v67_v34 }
  0xa4   :  { %v75_v35 = vpop.f32.mrf.mxu2 }
  0xa5   :  { %v76_v44 = vadd.f32 %v289_v32, %v75_v35 }
  0xa6   :  { %v69_v36 = vpop.f32.mrf.mxu0 }
  0xa7   :  { %v292_v37 = vpop.eup %291  ;;  %v70_v38 = vadd.f32 %v289_v32, %v69_v36 }
  0xa8   :  { %251 = vmatmul.msk.f32.vlgmr.msra.gmra.mxu1 %vm110_vm0, %v292_v37 }
  0xa9   :  { %293 = vtanh.f32 %v70_v38 }
  0xac   :  { %v78_v39 = vpop.f32.mrf.mxu2 }
  0xad   :  { %v79_v49 = vadd.f32 %v289_v32, %v78_v39 }
  0xae   :  { %v72_v40 = vpop.f32.mrf.mxu0 }
  0xaf   :  { %v294_v41 = vpop.eup %293  ;;  %v73_v42 = vadd.f32 %v289_v32, %v72_v40 }
  0xb0   :  { %252 = vmatmul.msk.f32.gmra.mxu1 %vm110_vm0, %v294_v41 }
  0xb1   :  { %295 = vtanh.f32 %v73_v42 }
  0xb4   :  { %v81_v43 = vpop.f32.mrf.mxu2 }
  0xb5   :  { %v82_v45 = vadd.f32 %v289_v32, %v81_v43 }
  0xb7   :  { %v296_v46 = vpop.eup %295  ;;  %297 = vtanh.f32 %v82_v45 }
  0xb8   :  { %253 = vmatmul.msk.f32.gmra.mxu1 %vm110_vm0, %v296_v46  ;;  %299 = vtanh.f32 %v76_v44 }
  0xbc   :  { %v84_v47 = vpop.f32.mrf.mxu2 }
  0xbd   :  { %v298_v48 = vpop.eup %297  ;;  %v85_v50 = vadd.f32 %v289_v32, %v84_v47 }
  0xbe   :  { %256 = vmatmul.msk.f32.vlgmr.msra.gmra.mxu3 %vm110_vm0, %v298_v48  ;;  %v300_v51 = vpop.eup %299 }
  0xbf   :  { %301 = vtanh.f32 %v85_v50 }
  0xc0   :  { %254 = vmatmul.msk.f32.gmra.mxu1 %vm110_vm0, %v300_v51  ;;  %303 = vtanh.f32 %v79_v49 }
  0xc4   :  { %v87_v52 = vpop.f32.mrf.mxu2 }
  0xc5   :  { %v302_v53 = vpop.eup %301  ;;  %v88_v54 = vadd.f32 %v289_v32, %v87_v52 }
  0xc6   :  { %257 = vmatmul.msk.f32.gmra.mxu3 %vm110_vm0, %v302_v53  ;;  %v304_v55 = vpop.eup %303 }
  0xc7   :  { %305 = vtanh.f32 %v88_v54 }
  0xc8   :  { %255 = vmatmul.msk.f32.gmra.mxu1 %vm110_vm0, %v304_v55 }
  0xcd   :  { %v306_v56 = vpop.eup %305 }
  0xce   :  { %258 = vmatmul.msk.f32.gmra.mxu3 %vm110_vm0, %v306_v56 }
 0x125   :  { %v152_v58 = vpop.f32.mrf.mxu1 }
 0x126   :  { %v153_v59 = vadd.f32 %v290_v57, %v152_v58 }
 0x128   :  { %177 = vst.msk [vmem:[#allocation2] sm:$0xff] %vm176_vm1, %v153_v59 }
 0x12d   :  { %v155_v60 = vpop.f32.mrf.mxu1 }
 0x12e   :  { %v156_v61 = vadd.f32 %v290_v57, %v155_v60 }
 0x130   :  { %178 = vst.msk [vmem:[#allocation2 + $0x8] sm:$0xff] %vm176_vm1, %v156_v61 }
 0x135   :  { %v158_v62 = vpop.f32.mrf.mxu1 }
 0x136   :  { %v159_v63 = vadd.f32 %v290_v57, %v158_v62 }
 0x138   :  { %179 = vst.msk [vmem:[#allocation2 + $0x10] sm:$0xff] %vm176_vm1, %v159_v63 }
 0x13d   :  { %v161_v0 = vpop.f32.mrf.mxu1 }
 0x13e   :  { %v162_v1 = vadd.f32 %v290_v57, %v161_v0 }
 0x140   :  { %180 = vst.msk [vmem:[#allocation2 + $0x18] sm:$0xff] %vm176_vm1, %v162_v1 }
 0x141   :  { %v167_v2 = vpop.f32.mrf.mxu3 }
 0x142   :  { %v168_v3 = vadd.f32 %v290_v57, %v167_v2 }
 0x144   :  { %182 = vst.msk [vmem:[#allocation2 + $0x28] sm:$0xff] %vm176_vm1, %v168_v3 }
 0x145   :  { %v164_v4 = vpop.f32.mrf.mxu1 }
 0x146   :  { %v165_v5 = vadd.f32 %v290_v57, %v164_v4 }
 0x147   :  { %v197_v6 = vld [vmem:[#allocation2 + $0x3] ss:$4 sm:$0xff]  ;;  %v193_v7 = vld [vmem:[#allocation2 + $0x2] ss:$4 sm:$0xff]  ;;  %v189_v8 = vld [vmem:[#allocation2 + $0x1] ss:$4 sm:$0xff] }
 0x148   :  { %181 = vst.msk [vmem:[#allocation2 + $0x20] sm:$0xff] %vm176_vm1, %v165_v5  ;;  %218 = vrot.lane.b32.xlu2 %v197_v6, %s333_s4  ;;  %210 = vrot.lane.b32.xlu1 %v193_v7, %s334_s1  ;;  %v185_v18 = vld [vmem:[#allocation2] ss:$4 sm:$0xff] }
 0x149   :  { %202 = vrot.lane.b32.xlu0 %v189_v8, %s335_s7  ;;  %v170_v9 = vpop.f32.mrf.mxu3 }
 0x14a   :  { %v171_v10 = vadd.f32 %v290_v57, %v170_v9 }
 0x14c   :  { %183 = vst.msk [vmem:[#allocation2 + $0x30] sm:$0xff] %vm176_vm1, %v171_v10 }
 0x151   :  { %v173_v11 = vpop.f32.mrf.mxu3 }
 0x152   :  { %v174_v12 = vadd.f32 %v290_v57, %v173_v11 }
 0x154   :  { %184 = vst.msk [vmem:[#allocation2 + $0x38] sm:$0xff] %vm176_vm1, %v174_v12 }
 0x15b   :  { %v199_v13 = vld [vmem:[#allocation2 + $0x23] ss:$4 sm:$0xff]  ;;  %v195_v14 = vld [vmem:[#allocation2 + $0x22] ss:$4 sm:$0xff]  ;;  %v191_v15 = vld [vmem:[#allocation2 + $0x21] ss:$4 sm:$0xff] }
 0x15c   :  { %220 = vrot.lane.b32.xlu2 %v199_v13, %s333_s4  ;;  %212 = vrot.lane.b32.xlu1 %v195_v14, %s334_s1  ;;  %v187_v24 = vld [vmem:[#allocation2 + $0x20] ss:$4 sm:$0xff] }
 0x15d   :  { %204 = vrot.lane.b32.xlu0 %v191_v15, %s335_s7 }
 0x1a2   :  { %v219_v20 = vpop.permute.xlu2 %218 }
 0x1b6   :  { %v221_v27 = vpop.permute.xlu2 %220 }
 0x1ba   :  { %v211_v16 = vpop.permute.xlu1 %210 }
 0x1bb   :  { %v203_v17 = vpop.permute.xlu0 %202 }
 0x1bc   :  { %v224_v19 = vsel %vm176_vm1, %v185_v18, %v203_v17 }
 0x1bd   :  { %v226_v21 = vsel %vm110_vm0, %v224_v19, %v211_v16 }
 0x1be   :  { %v229_v22 = vsel %vm228_vm2, %v226_v21, %v219_v20 }
 0x1bf   :  { %231 = vst [vmem:[#allocation3] sm:$0xff] %v229_v22 }
 0x1ce   :  { %v213_v23 = vpop.permute.xlu1 %212 }
 0x1cf   :  { %v205_v25 = vpop.permute.xlu0 %204 }
 0x1d0   :  { %v225_v26 = vsel %vm176_vm1, %v187_v24, %v205_v25 }
 0x1d1   :  { %v227_v28 = vsel %vm110_vm0, %v225_v26, %v213_v23 }
 0x1d2   :  { %v230_v29 = vsel %vm228_vm2, %v227_v28, %v221_v27 }
 0x1d3   :  { %232 = vst [vmem:[#allocation3 + $0x8] sm:$0xff] %v230_v29 }
 0x1d4   :  { %245 = dma.vmem_to_hbm [thread:$0]  %s238_s9, 256, %s240_s12, [#allocation4], %s337_s13, %s337_s13, %s338_s14  }
 0x1d5   :  { %331 = dma.done.wait [#allocation4], 256  }
 0x1d6   :  { %332 = vsyncadd [#allocation4], 4294967040 }
 0x1d7   :  { %250 = vsyncpa [#allocation4], 1 }

// kernel: tpu_custom_call.1
= control target key start
LH: loop header
LB: loop body
LE: loop exit
PB: predicated region body
PF: predicated region fallthrough
CT: control target
= control target key end

     0   :  { %vm109_vm0 = vcmask 523264   ;;  %vm175_vm1 = vcmask 261120   ;;  %s410_s1 = inlined_call_operand.vmem [shape: f32[128,64], index: 1, kind: input, shape index: {}]   ;;  %s411_s2 = inlined_call_operand.vmem [shape: f32[1,64], index: 2, kind: input, shape index: {}]   ;;  %s412_s0 = inlined_call_operand.vmem [shape: f32[50,128], index: 0, kind: input, shape index: {}]   ;;  %s413_s3 = inlined_call_operand.vmem [shape: f32[64,32], index: 3, kind: input, shape index: {}]   ;;  %s414_s4 = inlined_call_operand.vmem [shape: f32[1,32], index: 4, kind: input, shape index: {}]   ;;  %s415_s5 = inlined_call_operand.vmem [shape: f32[64,32], index: 5, kind: output, shape index: {}]  }
   0x1   :  { %v43_v0 = vld [vmem:[%s410_s1 + $0x78] sm:$0xff]  ;;  %v42_v1 = vld [vmem:[%s410_s1 + $0x70] sm:$0xff]  ;;  %v41_v2 = vld [vmem:[%s410_s1 + $0x68] sm:$0xff] }
   0x2   :  { %48 = vmatpush.msra.mxu0 %v43_v0  ;;  %196 = vmatpush.msra.mxu2 %v43_v0  ;;  %v40_v3 = vld [vmem:[%s410_s1 + $0x60] sm:$0xff]  ;;  %v39_v4 = vld [vmem:[%s410_s1 + $0x58] sm:$0xff]  ;;  %v38_v5 = vld [vmem:[%s410_s1 + $0x50] sm:$0xff] }
   0x3   :  { %v37_v6 = vld [vmem:[%s410_s1 + $0x48] sm:$0xff]  ;;  %v36_v7 = vld [vmem:[%s410_s1 + $0x40] sm:$0xff]  ;;  %v35_v8 = vld [vmem:[%s410_s1 + $0x38] sm:$0xff] }
   0x4   :  { %49 = vmatpush.msra.mxu0 %v42_v1  ;;  %197 = vmatpush.msra.mxu2 %v42_v1  ;;  %v34_v9 = vld [vmem:[%s410_s1 + $0x30] sm:$0xff]  ;;  %v33_v10 = vld [vmem:[%s410_s1 + $0x28] sm:$0xff]  ;;  %v32_v11 = vld [vmem:[%s410_s1 + $0x20] sm:$0xff] }
   0x5   :  { %v31_v12 = vld [vmem:[%s410_s1 + $0x18] sm:$0xff]  ;;  %v30_v13 = vld [vmem:[%s410_s1 + $0x10] sm:$0xff]  ;;  %v29_v14 = vld [vmem:[%s410_s1 + $0x8] sm:$0xff] }
   0x6   :  { %50 = vmatpush.msra.mxu0 %v41_v2  ;;  %198 = vmatpush.msra.mxu2 %v41_v2  ;;  %v28_v15 = vld [vmem:[%s410_s1] sm:$0xff]  ;;  %v23_v17 = vld [vmem:[%s412_s0 + $0x18] sm:$0xff]  ;;  %v103_v19 = vld [vmem:[%s413_s3 + $0x30] sm:$0xff] }
   0x7   :  { %v20_v16 = vld [vmem:[%s412_s0] sm:$0xff]  ;;  %v104_v18 = vld [vmem:[%s413_s3 + $0x38] sm:$0xff]  ;;  %v102_v20 = vld [vmem:[%s413_s3 + $0x28] sm:$0xff] }
   0x8   :  { %51 = vmatpush.msra.mxu0 %v40_v3  ;;  %199 = vmatpush.msra.mxu2 %v40_v3  ;;  %v21_v21 = vld [vmem:[%s412_s0 + $0x8] sm:$0xff]  ;;  %v24_v22 = vld [vmem:[%s412_s0 + $0x20] sm:$0xff]  ;;  %v22_v23 = vld [vmem:[%s412_s0 + $0x10] sm:$0xff] }
   0x9   :  { %142 = vmatpush.msra.mxu1 %v104_v18  ;;  %212 = vmatpush.msra.mxu3 %v104_v18  ;;  %v25_v24 = vld [vmem:[%s412_s0 + $0x28] sm:$0xff]  ;;  %v26_v25 = vld [vmem:[%s412_s0 + $0x30] sm:$0xff]  ;;  %v27_v26 = vld [vmem:[%s412_s0 + $0x38] sm:$0xff] }
   0xa   :  { %52 = vmatpush.msra.mxu0 %v39_v4  ;;  %200 = vmatpush.msra.mxu2 %v39_v4  ;;  %v101_v27 = vld [vmem:[%s413_s3 + $0x20] sm:$0xff]  ;;  %v100_v28 = vld [vmem:[%s413_s3 + $0x18] sm:$0xff]  ;;  %v99_v29 = vld [vmem:[%s413_s3 + $0x10] sm:$0xff] }
   0xb   :  { %143 = vmatpush.msra.mxu1 %v103_v19  ;;  %213 = vmatpush.msra.mxu3 %v103_v19  ;;  %v98_v30 = vld [vmem:[%s413_s3 + $0x8] sm:$0xff]  ;;  %v97_v31 = vld [vmem:[%s413_s3] sm:$0xff] }
   0xc   :  { %53 = vmatpush.msra.mxu0 %v38_v5  ;;  %201 = vmatpush.msra.mxu2 %v38_v5  ;;  %v220_v32 = vld [vmem:[%s411_s2] ss:$0 sm:$0xff] }
   0xd   :  { %144 = vmatpush.msra.mxu1 %v102_v20  ;;  %214 = vmatpush.msra.mxu3 %v102_v20  ;;  %v221_v57 = vld [vmem:[%s414_s4] ss:$0 sm:$0xff] }
   0xe   :  { %54 = vmatpush.msra.mxu0 %v37_v6  ;;  %202 = vmatpush.msra.mxu2 %v37_v6 }
   0xf   :  { %145 = vmatpush.msra.mxu1 %v101_v27  ;;  %215 = vmatpush.msra.mxu3 %v101_v27 }
  0x10   :  { %55 = vmatpush.msra.mxu0 %v36_v7  ;;  %203 = vmatpush.msra.mxu2 %v36_v7 }
  0x11   :  { %146 = vmatpush.msra.mxu1 %v100_v28  ;;  %216 = vmatpush.msra.mxu3 %v100_v28 }
  0x12   :  { %56 = vmatpush.msra.mxu0 %v35_v8  ;;  %204 = vmatpush.msra.mxu2 %v35_v8 }
  0x13   :  { %147 = vmatpush.msra.mxu1 %v99_v29  ;;  %217 = vmatpush.msra.mxu3 %v99_v29 }
  0x14   :  { %57 = vmatpush.msra.mxu0 %v34_v9  ;;  %205 = vmatpush.msra.mxu2 %v34_v9 }
  0x15   :  { %148 = vmatpush.msra.mxu1 %v98_v30  ;;  %218 = vmatpush.msra.mxu3 %v98_v30 }
  0x16   :  { %58 = vmatpush.msra.mxu0 %v33_v10  ;;  %206 = vmatpush.msra.mxu2 %v33_v10 }
  0x17   :  { %149 = vmatpush.msra.mxu1 %v97_v31  ;;  %219 = vmatpush.msra.mxu3 %v97_v31 }
  0x18   :  { %59 = vmatpush.msra.mxu0 %v32_v11  ;;  %207 = vmatpush.msra.mxu2 %v32_v11 }
  0x1a   :  { %60 = vmatpush.msra.mxu0 %v31_v12  ;;  %208 = vmatpush.msra.mxu2 %v31_v12 }
  0x1c   :  { %61 = vmatpush.msra.mxu0 %v30_v13  ;;  %209 = vmatpush.msra.mxu2 %v30_v13 }
  0x1e   :  { %62 = vmatpush.msra.mxu0 %v29_v14  ;;  %210 = vmatpush.msra.mxu2 %v29_v14 }
  0x20   :  { %63 = vmatpush.msra.mxu0 %v28_v15  ;;  %211 = vmatpush.msra.mxu2 %v28_v15 }
  0x21   :  { %64 = vmatmul.f32.vlgmr.msra.gmra.mxu0 %v20_v16  ;;  %73 = vmatmul.f32.vlgmr.msra.gmra.mxu2 %v23_v17 }
  0x29   :  { %67 = vmatmul.f32.gmra.mxu0 %v21_v21  ;;  %76 = vmatmul.f32.gmra.mxu2 %v24_v22 }
  0x31   :  { %70 = vmatmul.f32.gmra.mxu0 %v22_v23  ;;  %79 = vmatmul.f32.gmra.mxu2 %v25_v24 }
  0x39   :  { %82 = vmatmul.f32.gmra.mxu2 %v26_v25 }
  0x41   :  { %85 = vmatmul.f32.gmra.mxu2 %v27_v26 }
  0x9e   :  { %v65_v33 = vpop.f32.mrf.mxu0 }
  0x9f   :  { %v66_v34 = vadd.f32 %v220_v32, %v65_v33 }
  0xa1   :  { %222 = vtanh.f32 %v66_v34 }
  0xa4   :  { %v74_v35 = vpop.f32.mrf.mxu2 }
  0xa5   :  { %v75_v44 = vadd.f32 %v220_v32, %v74_v35 }
  0xa6   :  { %v68_v36 = vpop.f32.mrf.mxu0 }
  0xa7   :  { %v223_v37 = vpop.eup %222  ;;  %v69_v38 = vadd.f32 %v220_v32, %v68_v36 }
  0xa8   :  { %188 = vmatmul.msk.f32.vlgmr.msra.gmra.mxu1 %vm109_vm0, %v223_v37 }
  0xa9   :  { %224 = vtanh.f32 %v69_v38 }
  0xac   :  { %v77_v39 = vpop.f32.mrf.mxu2 }
  0xad   :  { %v78_v49 = vadd.f32 %v220_v32, %v77_v39 }
  0xae   :  { %v71_v40 = vpop.f32.mrf.mxu0 }
  0xaf   :  { %v225_v41 = vpop.eup %224  ;;  %v72_v42 = vadd.f32 %v220_v32, %v71_v40 }
  0xb0   :  { %189 = vmatmul.msk.f32.gmra.mxu1 %vm109_vm0, %v225_v41 }
  0xb1   :  { %226 = vtanh.f32 %v72_v42 }
  0xb4   :  { %v80_v43 = vpop.f32.mrf.mxu2 }
  0xb5   :  { %v81_v45 = vadd.f32 %v220_v32, %v80_v43 }
  0xb7   :  { %v227_v46 = vpop.eup %226  ;;  %228 = vtanh.f32 %v81_v45 }
  0xb8   :  { %190 = vmatmul.msk.f32.gmra.mxu1 %vm109_vm0, %v227_v46  ;;  %230 = vtanh.f32 %v75_v44 }
  0xbc   :  { %v83_v47 = vpop.f32.mrf.mxu2 }
  0xbd   :  { %v229_v48 = vpop.eup %228  ;;  %v84_v50 = vadd.f32 %v220_v32, %v83_v47 }
  0xbe   :  { %193 = vmatmul.msk.f32.vlgmr.msra.gmra.mxu3 %vm109_vm0, %v229_v48  ;;  %v231_v51 = vpop.eup %230 }
  0xbf   :  { %232 = vtanh.f32 %v84_v50 }
  0xc0   :  { %191 = vmatmul.msk.f32.gmra.mxu1 %vm109_vm0, %v231_v51  ;;  %234 = vtanh.f32 %v78_v49 }
  0xc4   :  { %v86_v52 = vpop.f32.mrf.mxu2 }
  0xc5   :  { %v233_v53 = vpop.eup %232  ;;  %v87_v54 = vadd.f32 %v220_v32, %v86_v52 }
  0xc6   :  { %194 = vmatmul.msk.f32.gmra.mxu3 %vm109_vm0, %v233_v53  ;;  %v235_v55 = vpop.eup %234 }
  0xc7   :  { %236 = vtanh.f32 %v87_v54 }
  0xc8   :  { %192 = vmatmul.msk.f32.gmra.mxu1 %vm109_vm0, %v235_v55 }
  0xcd   :  { %v237_v56 = vpop.eup %236 }
  0xce   :  { %195 = vmatmul.msk.f32.gmra.mxu3 %vm109_vm0, %v237_v56 }
 0x125   :  { %v151_v58 = vpop.f32.mrf.mxu1 }
 0x126   :  { %v152_v59 = vadd.f32 %v221_v57, %v151_v58 }
 0x128   :  { %176 = vst.msk [vmem:[%s415_s5] sm:$0xff] %vm175_vm1, %v152_v59 }
 0x12d   :  { %v154_v60 = vpop.f32.mrf.mxu1 }
 0x12e   :  { %v155_v61 = vadd.f32 %v221_v57, %v154_v60 }
 0x130   :  { %177 = vst.msk [vmem:[%s415_s5 + $0x8] sm:$0xff] %vm175_vm1, %v155_v61 }
 0x135   :  { %v157_v62 = vpop.f32.mrf.mxu1 }
 0x136   :  { %v158_v63 = vadd.f32 %v221_v57, %v157_v62 }
 0x138   :  { %178 = vst.msk [vmem:[%s415_s5 + $0x10] sm:$0xff] %vm175_vm1, %v158_v63 }
 0x13d   :  { %v160_v0 = vpop.f32.mrf.mxu1 }
 0x13e   :  { %v161_v1 = vadd.f32 %v221_v57, %v160_v0 }
 0x140   :  { %179 = vst.msk [vmem:[%s415_s5 + $0x18] sm:$0xff] %vm175_vm1, %v161_v1 }
 0x141   :  { %v166_v2 = vpop.f32.mrf.mxu3 }
 0x142   :  { %v167_v3 = vadd.f32 %v221_v57, %v166_v2 }
 0x144   :  { %181 = vst.msk [vmem:[%s415_s5 + $0x28] sm:$0xff] %vm175_vm1, %v167_v3 }
 0x145   :  { %v163_v4 = vpop.f32.mrf.mxu1 }
 0x146   :  { %v164_v5 = vadd.f32 %v221_v57, %v163_v4 }
 0x148   :  { %180 = vst.msk [vmem:[%s415_s5 + $0x20] sm:$0xff] %vm175_vm1, %v164_v5 }
 0x149   :  { %v169_v6 = vpop.f32.mrf.mxu3 }
 0x14a   :  { %v170_v7 = vadd.f32 %v221_v57, %v169_v6 }
 0x14c   :  { %182 = vst.msk [vmem:[%s415_s5 + $0x30] sm:$0xff] %vm175_vm1, %v170_v7 }
 0x151   :  { %v172_v8 = vpop.f32.mrf.mxu3 }
 0x152   :  { %v173_v9 = vadd.f32 %v221_v57, %v172_v8 }
 0x154   :  { %183 = vst.msk [vmem:[%s415_s5 + $0x38] sm:$0xff] %vm175_vm1, %v173_v9 }

</bundles_post_ra>
